<compile_context>
chip_gen: v7x
topology: tpu7x:2x2x1
jax: 0.10.0
libtpu: 0.0.40
codegen_flags: <defaults>
</compile_context>

<pallas_src>
import functools

import jax
import jax.numpy as jnp
from jax.experimental import pallas as pl
from jax.experimental.pallas import tpu as pltpu

LANES = 128
MAX_TM = 2048      # 2048x128 f32 = 1 MiB per input block; VMEM-safe on v7x too


def _num_tensorcores():
    """Best-effort TensorCore-per-chip count (2 on v7x, 1 on v5e/v6e)."""
    try:
        info = pltpu.get_tpu_info()
    except Exception:
        return 2
    for attr in ("num_cores", "num_tensorcores", "tensorcore_count", "core_count"):
        v = getattr(info, attr, None)
        if v is None:
            continue
        try:
            v = int(v)
        except (TypeError, ValueError):
            continue
        if v >= 1:
            return min(v, 8)
    return 2


def _dice_focal_kernel(x_ref, t_ref, acc_ref, *, gamma, eps, tm,
                       tiles_per_core, num_tiles, full_rows, rem_lanes):
    # acc_ref block: (1, 5, 8, LANES) f32, resident across the inner grid axis.
    c = pl.program_id(0)
    i = pl.program_id(1)

    @pl.when(i == 0)
    def _():
        acc_ref[...] = jnp.zeros_like(acc_ref)

    tile_idx = c * tiles_per_core + i
    in_range = tile_idx < num_tiles            # clamped over-range tiles: skip

    @pl.when(in_range)
    def _():
        x = x_ref[...].astype(jnp.float32)     # raw logits
        t = t_ref[...].astype(jnp.float32)     # targets (may arrive bf16)

        # Numerically-stable logits-form sigmoid / BCE:
        #   sp       = softplus(-|x|) = log(1 + exp(-|x|))
        #   log p    = min(x, 0) - sp
        #   log(1-p) = -max(x, 0) - sp
        #   p        = exp(log p)                (no f32 divide)
        # PyTorch F.binary_cross_entropy clamps each log term at -100.
        sp = jnp.log(1.0 + jnp.exp(-jnp.abs(x)))
        log_p = jnp.minimum(x, 0.0) - sp
        log_1mp = -jnp.maximum(x, 0.0) - sp
        p = jnp.exp(log_p)
        bce = -(t * jnp.maximum(log_p, -100.0)
                + (1.0 - t) * jnp.maximum(log_1mp, -100.0))
        logit = jnp.clip(p, eps, 1.0 - eps)
        fw = (1.0 - logit) ** gamma            # gamma is a Python int -> VPU muls

        terms = (p * t, p, t, bce, fw)         # intersection, sum p, sum t, ...

        def accum(mask=None):
            # Fold (tm, 128) -> (8, 128) with sublane-group adds (VALU only),
            # keeping the resident accumulator and its stores tiny.
            for j, v in enumerate(terms):
                if mask is not None:
                    # Select (not multiply) so edge-block pad garbage
                    # (possibly NaN/Inf) never reaches the sums.
                    v = jnp.where(mask, v, 0.0)
                acc_ref[0, j] += jnp.sum(v.reshape(tm // 8, 8, LANES), axis=0)

        # A tile is "full" iff every one of its tm*128 elements is real data.
        full_tile = (tile_idx + 1) * tm <= full_rows

        @pl.when(full_tile)
        def _():
            accum()                            # hot path: zero masking work

        @pl.when(jnp.logical_not(full_tile))
        def _():
            # Ragged tail tile: mask in row units (no int32 element-offset
            # overflow even for >= 2^31-element inputs).
            row = jax.lax.broadcasted_iota(jnp.int32, (tm, LANES), 0)
            g_row = tile_idx * tm + row
            if rem_lanes:
                lane = jax.lax.broadcasted_iota(jnp.int32, (tm, LANES), 1)
                valid = (g_row < full_rows) | ((g_row == full_rows)
                                               & (lane < rem_lanes))
            else:
                valid = g_row < full_rows
            accum(valid)


def dice_focal_loss(logits, target, gamma=2, eps=1e-7):
    # Keep gamma a Python int when possible: a float gamma makes ** lower to
    # exp(gamma * log(.)), adding two EUP transcendentals per element.
    if float(gamma) == int(gamma):
        gamma = int(gamma)
    # TODO(synk): non-integer gamma falls back to pow's exp/log lowering.

    n = int(logits.size)
    x = logits.reshape(-1)
    t = target.reshape(-1)

    # Only pad the (at most 127-element) remainder needed to view the flat
    # arrays as (rows, 128); no full-chunk padding and no ones-mask array.
    rows = pl.cdiv(n, LANES)
    pad = rows * LANES - n
    if pad:
        x = jnp.pad(x, (0, pad))
        t = jnp.pad(t, (0, pad))
    x = x.reshape(rows, LANES)
    t = t.reshape(rows, LANES)

    # Row-tile: as large as sensible to amortize per-step overhead, rounded to
    # a multiple of 16 (sublane-pack friendly for both f32 and bf16 inputs).
    tm = min(MAX_TM, ((rows + 15) // 16) * 16)
    num_tiles = pl.cdiv(rows, tm)
    num_cores = max(1, min(_num_tensorcores(), num_tiles))
    tiles_per_core = pl.cdiv(num_tiles, num_cores)

    def in_map(c, i):
        # Clamp so the DMA never walks past the array; over-range tiles are
        # compute-skipped inside the kernel (pl.when(in_range)).
        return (jnp.minimum(c * tiles_per_core + i, num_tiles - 1), 0)

    kernel = functools.partial(
        _dice_focal_kernel, gamma=gamma, eps=float(eps), tm=tm,
        tiles_per_core=tiles_per_core, num_tiles=num_tiles,
        full_rows=n // LANES, rem_lanes=n % LANES)

    # TODO(synk): on v7x, confirm the leading axis genuinely shards across both
    # TensorCores; if plain "parallel" serializes, switch it to CORE_PARALLEL /
    # pl.core_map. On v5e, shipping bf16 logits (cast per block in-kernel)
    # halves the dominant HBM stream.
    acc = pl.pallas_call(
        kernel,
        out_shape=jax.ShapeDtypeStruct((num_cores, 5, 8, LANES), jnp.float32),
        grid_spec=pltpu.PrefetchScalarGridSpec(
            num_scalar_prefetch=0,
            grid=(num_cores, tiles_per_core),
            in_specs=[pl.BlockSpec((tm, LANES), in_map),
                      pl.BlockSpec((tm, LANES), in_map)],
            out_specs=pl.BlockSpec((1, 5, 8, LANES), lambda c, i: (c, 0, 0, 0)),
        ),
        compiler_params=pltpu.CompilerParams(
            dimension_semantics=("parallel", "arbitrary")),
    )(x, t)

    # Glue: reduce per-core accumulator slabs to 5 scalars and combine.
    sums = jnp.sum(acc, axis=(0, 2, 3))   # (5,)
    pt_sum, p_sum, t_sum, bce_sum, fw_sum = (sums[0], sums[1], sums[2],
                                             sums[3], sums[4])
    nf = jnp.float32(n)
    dice_loss = 1.0 - (2.0 * pt_sum + 1.0) / (p_sum + t_sum + 1.0)
    # PyTorch semantics: scalar mean(bce) times vector (1-logit)^gamma, then
    # mean  =>  mean(bce) * mean((1-logit)^gamma).
    focal_loss = (bce_sum / nf) * (fw_sum / nf)
    return focal_loss + dice_loss


def _reference(logits, target, gamma=2, eps=1e-7):
    p = jax.nn.sigmoid(logits.astype(jnp.float32)).reshape(-1)
    t = target.reshape(-1).astype(jnp.float32)
    inter = jnp.sum(p * t)
    dice = 1.0 - (2.0 * inter + 1.0) / (jnp.sum(p) + jnp.sum(t) + 1.0)
    logit = jnp.clip(p, eps, 1.0 - eps)
    bce = jnp.mean(-(t * jnp.maximum(jnp.log(p), -100.0)
                     + (1.0 - t) * jnp.maximum(jnp.log(1.0 - p), -100.0)))
    focal = bce * (1.0 - logit) ** gamma
    return jnp.mean(focal) + dice


if __name__ == "__main__":
    key = jax.random.PRNGKey(0)
    kx, kt = jax.random.split(key)
    # NCHW-shaped synthetic inputs, as a segmentation head would emit.
    x = jax.random.normal(kx, (2, 4, 16, 16), dtype=jnp.float32)
    # Binary targets shipped as bf16: exact for {0,1}, halves target HBM bytes.
    tgt = (jax.random.uniform(kt, (2, 4, 16, 16)) > 0.5).astype(jnp.bfloat16)

    loss = jax.block_until_ready(dice_focal_loss(x, tgt))
    ref = jax.block_until_ready(_reference(x, tgt))
    assert jnp.allclose(loss, ref, rtol=1e-5, atol=1e-5), (loss, ref)
    print("KERNEL_OK")
</pallas_src>

<mosaic_0001>
module attributes {stable_mosaic.version = 11 : i64} {
  func.func @_dice_focal_kernel(%arg0: i32, %arg1: i32, %arg2: memref<16x128xf32, #tpu.memory_space<vmem>>, %arg3: memref<16x128xbf16, #tpu.memory_space<vmem>>, %arg4: memref<1x5x8x128xf32, #tpu.memory_space<vmem>>) attributes {dimension_semantics = [#tpu.dimension_semantics<parallel>, #tpu.dimension_semantics<arbitrary>], iteration_bounds = array<i64: 1, 1>, scalar_prefetch = 0 : i64, scratch_operands = 0 : i64, tpu.core_type = #tpu.core_type<tc>, window_params = [{transform_indices = @transform_0, window_bounds = array<i64: 16, 128>}, {transform_indices = @transform_1, window_bounds = array<i64: 16, 128>}, {transform_indices = @transform_2, window_bounds = array<i64: 1, 5, 8, 128>}]} {
    %c0_i32 = arith.constant 0 : i32
    %0 = arith.cmpi eq, %arg1, %c0_i32 : i32
    %1 = arith.extui %0 : i1 to i32
    %c0_i32_0 = arith.constant 0 : i32
    %2 = arith.cmpi ne, %1, %c0_i32_0 : i32
    scf.if %2 {
      %cst = arith.constant 0.000000e+00 : f32
      %8 = vector.broadcast %cst : f32 to vector<1x5x8x128xf32>
      %c0 = arith.constant 0 : index
      %c0_3 = arith.constant 0 : index
      %c0_4 = arith.constant 0 : index
      %c0_5 = arith.constant 0 : index
      %9 = vector.load %arg4[%c0, %c0_3, %c0_4, %c0_5] : memref<1x5x8x128xf32, #tpu.memory_space<vmem>>, vector<1x5x8x128xf32>
      tpu.vector_store %arg4[%c0, %c0_3, %c0_4, %c0_5], %8 {strides = array<i32>} : memref<1x5x8x128xf32, #tpu.memory_space<vmem>>, vector<1x5x8x128xf32>,
    } else {
    }
    %c1_i32 = arith.constant 1 : i32
    %3 = arith.muli %arg0, %c1_i32 : i32
    %4 = arith.addi %3, %arg1 : i32
    %c1_i32_1 = arith.constant 1 : i32
    %5 = arith.cmpi slt, %4, %c1_i32_1 : i32
    %6 = arith.extui %5 : i1 to i32
    %c0_i32_2 = arith.constant 0 : i32
    %7 = arith.cmpi ne, %6, %c0_i32_2 : i32
    scf.if %7 {
      %c0 = arith.constant 0 : index
      %c0_3 = arith.constant 0 : index
      %8 = vector.load %arg2[%c0, %c0_3] : memref<16x128xf32, #tpu.memory_space<vmem>>, vector<16x128xf32>
      %c0_4 = arith.constant 0 : index
      %c0_5 = arith.constant 0 : index
      %9 = vector.load %arg3[%c0_4, %c0_5] : memref<16x128xbf16, #tpu.memory_space<vmem>>, vector<16x128xbf16>
      %10 = arith.extf %9 : vector<16x128xbf16> to vector<16x128xf32>
      %11 = math.absf %8 : vector<16x128xf32>
      %cst = arith.constant 0.000000e+00 : f32
      %12 = vector.broadcast %cst : f32 to vector<16x128xf32>
      %13 = arith.subf %12, %11 : vector<16x128xf32>
      %14 = math.exp %13 : vector<16x128xf32>
      %cst_6 = arith.constant 1.000000e+00 : f32
      %15 = vector.broadcast %cst_6 : f32 to vector<16x128xf32>
      %16 = arith.addf %15, %14 : vector<16x128xf32>
      %17 = math.log %16 : vector<16x128xf32>
      %cst_7 = arith.constant 0.000000e+00 : f32
      %18 = vector.broadcast %cst_7 : f32 to vector<16x128xf32>
      %19 = arith.minimumf %8, %18 : vector<16x128xf32>
      %20 = arith.subf %19, %17 : vector<16x128xf32>
      %cst_8 = arith.constant 0.000000e+00 : f32
      %21 = vector.broadcast %cst_8 : f32 to vector<16x128xf32>
      %22 = arith.maximumf %8, %21 : vector<16x128xf32>
      %cst_9 = arith.constant 0.000000e+00 : f32
      %23 = vector.broadcast %cst_9 : f32 to vector<16x128xf32>
      %24 = arith.subf %23, %22 : vector<16x128xf32>
      %25 = arith.subf %24, %17 : vector<16x128xf32>
      %26 = math.exp %20 : vector<16x128xf32>
      %cst_10 = arith.constant -1.000000e+02 : f32
      %27 = vector.broadcast %cst_10 : f32 to vector<16x128xf32>
      %28 = arith.maximumf %20, %27 : vector<16x128xf32>
      %29 = arith.mulf %10, %28 : vector<16x128xf32>
      %cst_11 = arith.constant 1.000000e+00 : f32
      %30 = vector.broadcast %cst_11 : f32 to vector<16x128xf32>
      %31 = arith.subf %30, %10 : vector<16x128xf32>
      %cst_12 = arith.constant -1.000000e+02 : f32
      %32 = vector.broadcast %cst_12 : f32 to vector<16x128xf32>
      %33 = arith.maximumf %25, %32 : vector<16x128xf32>
      %34 = arith.mulf %31, %33 : vector<16x128xf32>
      %35 = arith.addf %29, %34 : vector<16x128xf32>
      %cst_13 = arith.constant 0.000000e+00 : f32
      %36 = vector.broadcast %cst_13 : f32 to vector<16x128xf32>
      %37 = arith.subf %36, %35 : vector<16x128xf32>
      %cst_14 = arith.constant 1.000000e-07 : f32
      %cst_15 = arith.constant 0.99999988 : f32
      %38 = vector.broadcast %cst_14 : f32 to vector<16x128xf32>
      %39 = arith.maximumf %38, %26 : vector<16x128xf32>
      %40 = vector.broadcast %cst_15 : f32 to vector<16x128xf32>
      %41 = arith.minimumf %40, %39 : vector<16x128xf32>
      %cst_16 = arith.constant 1.000000e+00 : f32
      %42 = vector.broadcast %cst_16 : f32 to vector<16x128xf32>
      %43 = arith.subf %42, %41 : vector<16x128xf32>
      %44 = arith.mulf %43, %43 : vector<16x128xf32>
      %45 = arith.mulf %26, %10 : vector<16x128xf32>
      %c1_i32_17 = arith.constant 1 : i32
      %46 = arith.addi %4, %c1_i32_17 : i32
      %c16_i32 = arith.constant 16 : i32
      %47 = arith.muli %46, %c16_i32 : i32
      %c16_i32_18 = arith.constant 16 : i32
      %48 = arith.cmpi sle, %47, %c16_i32_18 : i32
      %49 = arith.extui %48 : i1 to i32
      %c0_i32_19 = arith.constant 0 : i32
      %50 = arith.cmpi ne, %49, %c0_i32_19 : i32
      scf.if %50 {
        %c0_21 = arith.constant 0 : index
        %c0_22 = arith.constant 0 : index
        %c0_23 = arith.constant 0 : index
        %c0_24 = arith.constant 0 : index
        %54 = vector.load %arg4[%c0_21, %c0_22, %c0_23, %c0_24] : memref<1x5x8x128xf32, #tpu.memory_space<vmem>>, vector<1x1x8x128xf32>
        %55 = vector.shape_cast %54 : vector<1x1x8x128xf32> to vector<8x128xf32>
        %56 = vector.shape_cast %45 : vector<16x128xf32> to vector<2x8x128xf32>
        %cst_25 = arith.constant dense<0.000000e+00> : vector<8x128xf32>
        %57 = vector.multi_reduction <add>, %56, %cst_25 [0] : vector<2x8x128xf32> to vector<8x128xf32>
        %58 = arith.addf %55, %57 : vector<8x128xf32>
        %c0_26 = arith.constant 0 : index
        %c0_27 = arith.constant 0 : index
        %c0_28 = arith.constant 0 : index
        %c0_29 = arith.constant 0 : index
        %59 = vector.load %arg4[%c0_26, %c0_27, %c0_28, %c0_29] : memref<1x5x8x128xf32, #tpu.memory_space<vmem>>, vector<1x1x8x128xf32>
        %60 = vector.shape_cast %59 : vector<1x1x8x128xf32> to vector<8x128xf32>
        %61 = vector.shape_cast %58 : vector<8x128xf32> to vector<1x1x8x128xf32>
        tpu.vector_store %arg4[%c0_26, %c0_27, %c0_28, %c0_29], %61 {strides = array<i32>} : memref<1x5x8x128xf32, #tpu.memory_space<vmem>>, vector<1x1x8x128xf32>,
        %c0_30 = arith.constant 0 : index
        %c1 = arith.constant 1 : index
        %c0_31 = arith.constant 0 : index
        %c0_32 = arith.constant 0 : index
        %62 = vector.load %arg4[%c0_30, %c1, %c0_31, %c0_32] : memref<1x5x8x128xf32, #tpu.memory_space<vmem>>, vector<1x1x8x128xf32>
        %63 = vector.shape_cast %62 : vector<1x1x8x128xf32> to vector<8x128xf32>
        %64 = vector.shape_cast %26 : vector<16x128xf32> to vector<2x8x128xf32>
        %cst_33 = arith.constant dense<0.000000e+00> : vector<8x128xf32>
        %65 = vector.multi_reduction <add>, %64, %cst_33 [0] : vector<2x8x128xf32> to vector<8x128xf32>
        %66 = arith.addf %63, %65 : vector<8x128xf32>
        %c0_34 = arith.constant 0 : index
        %c1_35 = arith.constant 1 : index
        %c0_36 = arith.constant 0 : index
        %c0_37 = arith.constant 0 : index
        %67 = vector.load %arg4[%c0_34, %c1_35, %c0_36, %c0_37] : memref<1x5x8x128xf32, #tpu.memory_space<vmem>>, vector<1x1x8x128xf32>
        %68 = vector.shape_cast %67 : vector<1x1x8x128xf32> to vector<8x128xf32>
        %69 = vector.shape_cast %66 : vector<8x128xf32> to vector<1x1x8x128xf32>
        tpu.vector_store %arg4[%c0_34, %c1_35, %c0_36, %c0_37], %69 {strides = array<i32>} : memref<1x5x8x128xf32, #tpu.memory_space<vmem>>, vector<1x1x8x128xf32>,
        %c0_38 = arith.constant 0 : index
        %c2 = arith.constant 2 : index
        %c0_39 = arith.constant 0 : index
        %c0_40 = arith.constant 0 : index
        %70 = vector.load %arg4[%c0_38, %c2, %c0_39, %c0_40] : memref<1x5x8x128xf32, #tpu.memory_space<vmem>>, vector<1x1x8x128xf32>
        %71 = vector.shape_cast %70 : vector<1x1x8x128xf32> to vector<8x128xf32>
        %72 = vector.shape_cast %10 : vector<16x128xf32> to vector<2x8x128xf32>
        %cst_41 = arith.constant dense<0.000000e+00> : vector<8x128xf32>
        %73 = vector.multi_reduction <add>, %72, %cst_41 [0] : vector<2x8x128xf32> to vector<8x128xf32>
        %74 = arith.addf %71, %73 : vector<8x128xf32>
        %c0_42 = arith.constant 0 : index
        %c2_43 = arith.constant 2 : index
        %c0_44 = arith.constant 0 : index
        %c0_45 = arith.constant 0 : index
        %75 = vector.load %arg4[%c0_42, %c2_43, %c0_44, %c0_45] : memref<1x5x8x128xf32, #tpu.memory_space<vmem>>, vector<1x1x8x128xf32>
        %76 = vector.shape_cast %75 : vector<1x1x8x128xf32> to vector<8x128xf32>
        %77 = vector.shape_cast %74 : vector<8x128xf32> to vector<1x1x8x128xf32>
        tpu.vector_store %arg4[%c0_42, %c2_43, %c0_44, %c0_45], %77 {strides = array<i32>} : memref<1x5x8x128xf32, #tpu.memory_space<vmem>>, vector<1x1x8x128xf32>,
        %c0_46 = arith.constant 0 : index
        %c3 = arith.constant 3 : index
        %c0_47 = arith.constant 0 : index
        %c0_48 = arith.constant 0 : index
        %78 = vector.load %arg4[%c0_46, %c3, %c0_47, %c0_48] : memref<1x5x8x128xf32, #tpu.memory_space<vmem>>, vector<1x1x8x128xf32>
        %79 = vector.shape_cast %78 : vector<1x1x8x128xf32> to vector<8x128xf32>
        %80 = vector.shape_cast %37 : vector<16x128xf32> to vector<2x8x128xf32>
        %cst_49 = arith.constant dense<0.000000e+00> : vector<8x128xf32>
        %81 = vector.multi_reduction <add>, %80, %cst_49 [0] : vector<2x8x128xf32> to vector<8x128xf32>
        %82 = arith.addf %79, %81 : vector<8x128xf32>
        %c0_50 = arith.constant 0 : index
        %c3_51 = arith.constant 3 : index
        %c0_52 = arith.constant 0 : index
        %c0_53 = arith.constant 0 : index
        %83 = vector.load %arg4[%c0_50, %c3_51, %c0_52, %c0_53] : memref<1x5x8x128xf32, #tpu.memory_space<vmem>>, vector<1x1x8x128xf32>
        %84 = vector.shape_cast %83 : vector<1x1x8x128xf32> to vector<8x128xf32>
        %85 = vector.shape_cast %82 : vector<8x128xf32> to vector<1x1x8x128xf32>
        tpu.vector_store %arg4[%c0_50, %c3_51, %c0_52, %c0_53], %85 {strides = array<i32>} : memref<1x5x8x128xf32, #tpu.memory_space<vmem>>, vector<1x1x8x128xf32>,
        %c0_54 = arith.constant 0 : index
        %c4 = arith.constant 4 : index
        %c0_55 = arith.constant 0 : index
        %c0_56 = arith.constant 0 : index
        %86 = vector.load %arg4[%c0_54, %c4, %c0_55, %c0_56] : memref<1x5x8x128xf32, #tpu.memory_space<vmem>>, vector<1x1x8x128xf32>
        %87 = vector.shape_cast %86 : vector<1x1x8x128xf32> to vector<8x128xf32>
        %88 = vector.shape_cast %44 : vector<16x128xf32> to vector<2x8x128xf32>
        %cst_57 = arith.constant dense<0.000000e+00> : vector<8x128xf32>
        %89 = vector.multi_reduction <add>, %88, %cst_57 [0] : vector<2x8x128xf32> to vector<8x128xf32>
        %90 = arith.addf %87, %89 : vector<8x128xf32>
        %c0_58 = arith.constant 0 : index
        %c4_59 = arith.constant 4 : index
        %c0_60 = arith.constant 0 : index
        %c0_61 = arith.constant 0 : index
        %91 = vector.load %arg4[%c0_58, %c4_59, %c0_60, %c0_61] : memref<1x5x8x128xf32, #tpu.memory_space<vmem>>, vector<1x1x8x128xf32>
        %92 = vector.shape_cast %91 : vector<1x1x8x128xf32> to vector<8x128xf32>
        %93 = vector.shape_cast %90 : vector<8x128xf32> to vector<1x1x8x128xf32>
        tpu.vector_store %arg4[%c0_58, %c4_59, %c0_60, %c0_61], %93 {strides = array<i32>} : memref<1x5x8x128xf32, #tpu.memory_space<vmem>>, vector<1x1x8x128xf32>,
      } else {
      }
      %true = arith.constant true
      %51 = arith.xori %48, %true : i1
      %52 = arith.extui %51 : i1 to i32
      %c0_i32_20 = arith.constant 0 : i32
      %53 = arith.cmpi ne, %52, %c0_i32_20 : i32
      scf.if %53 {
        %54 = tpu.iota {dimensions = array<i32: 0>} : vector<16x128xi32>
        %c16_i32_21 = arith.constant 16 : i32
        %55 = arith.muli %4, %c16_i32_21 : i32
        %56 = vector.broadcast %55 : i32 to vector<16x128xi32>
        %57 = arith.addi %56, %54 : vector<16x128xi32>
        %c16_i32_22 = arith.constant 16 : i32
        %58 = vector.broadcast %c16_i32_22 : i32 to vector<16x128xi32>
        %59 = arith.cmpi slt, %57, %58 : vector<16x128xi32>
        %cst_23 = arith.constant 0.000000e+00 : f32
        %60 = vector.broadcast %cst_23 : f32 to vector<16x128xf32>
        %61 = arith.select %59, %45, %60 : vector<16x128xi1>, vector<16x128xf32>
        %c0_24 = arith.constant 0 : index
        %c0_25 = arith.constant 0 : index
        %c0_26 = arith.constant 0 : index
        %c0_27 = arith.constant 0 : index
        %62 = vector.load %arg4[%c0_24, %c0_25, %c0_26, %c0_27] : memref<1x5x8x128xf32, #tpu.memory_space<vmem>>, vector<1x1x8x128xf32>
        %63 = vector.shape_cast %62 : vector<1x1x8x128xf32> to vector<8x128xf32>
        %64 = vector.shape_cast %61 : vector<16x128xf32> to vector<2x8x128xf32>
        %cst_28 = arith.constant dense<0.000000e+00> : vector<8x128xf32>
        %65 = vector.multi_reduction <add>, %64, %cst_28 [0] : vector<2x8x128xf32> to vector<8x128xf32>
        %66 = arith.addf %63, %65 : vector<8x128xf32>
        %c0_29 = arith.constant 0 : index
        %c0_30 = arith.constant 0 : index
        %c0_31 = arith.constant 0 : index
        %c0_32 = arith.constant 0 : index
        %67 = vector.load %arg4[%c0_29, %c0_30, %c0_31, %c0_32] : memref<1x5x8x128xf32, #tpu.memory_space<vmem>>, vector<1x1x8x128xf32>
        %68 = vector.shape_cast %67 : vector<1x1x8x128xf32> to vector<8x128xf32>
        %69 = vector.shape_cast %66 : vector<8x128xf32> to vector<1x1x8x128xf32>
        tpu.vector_store %arg4[%c0_29, %c0_30, %c0_31, %c0_32], %69 {strides = array<i32>} : memref<1x5x8x128xf32, #tpu.memory_space<vmem>>, vector<1x1x8x128xf32>,
        %cst_33 = arith.constant 0.000000e+00 : f32
        %70 = vector.broadcast %cst_33 : f32 to vector<16x128xf32>
        %71 = arith.select %59, %26, %70 : vector<16x128xi1>, vector<16x128xf32>
        %c0_34 = arith.constant 0 : index
        %c1 = arith.constant 1 : index
        %c0_35 = arith.constant 0 : index
        %c0_36 = arith.constant 0 : index
        %72 = vector.load %arg4[%c0_34, %c1, %c0_35, %c0_36] : memref<1x5x8x128xf32, #tpu.memory_space<vmem>>, vector<1x1x8x128xf32>
        %73 = vector.shape_cast %72 : vector<1x1x8x128xf32> to vector<8x128xf32>
        %74 = vector.shape_cast %71 : vector<16x128xf32> to vector<2x8x128xf32>
        %cst_37 = arith.constant dense<0.000000e+00> : vector<8x128xf32>
        %75 = vector.multi_reduction <add>, %74, %cst_37 [0] : vector<2x8x128xf32> to vector<8x128xf32>
        %76 = arith.addf %73, %75 : vector<8x128xf32>
        %c0_38 = arith.constant 0 : index
        %c1_39 = arith.constant 1 : index
        %c0_40 = arith.constant 0 : index
        %c0_41 = arith.constant 0 : index
        %77 = vector.load %arg4[%c0_38, %c1_39, %c0_40, %c0_41] : memref<1x5x8x128xf32, #tpu.memory_space<vmem>>, vector<1x1x8x128xf32>
        %78 = vector.shape_cast %77 : vector<1x1x8x128xf32> to vector<8x128xf32>
        %79 = vector.shape_cast %76 : vector<8x128xf32> to vector<1x1x8x128xf32>
        tpu.vector_store %arg4[%c0_38, %c1_39, %c0_40, %c0_41], %79 {strides = array<i32>} : memref<1x5x8x128xf32, #tpu.memory_space<vmem>>, vector<1x1x8x128xf32>,
        %cst_42 = arith.constant 0.000000e+00 : f32
        %80 = vector.broadcast %cst_42 : f32 to vector<16x128xf32>
        %81 = arith.select %59, %10, %80 : vector<16x128xi1>, vector<16x128xf32>
        %c0_43 = arith.constant 0 : index
        %c2 = arith.constant 2 : index
        %c0_44 = arith.constant 0 : index
        %c0_45 = arith.constant 0 : index
        %82 = vector.load %arg4[%c0_43, %c2, %c0_44, %c0_45] : memref<1x5x8x128xf32, #tpu.memory_space<vmem>>, vector<1x1x8x128xf32>
        %83 = vector.shape_cast %82 : vector<1x1x8x128xf32> to vector<8x128xf32>
        %84 = vector.shape_cast %81 : vector<16x128xf32> to vector<2x8x128xf32>
        %cst_46 = arith.constant dense<0.000000e+00> : vector<8x128xf32>
        %85 = vector.multi_reduction <add>, %84, %cst_46 [0] : vector<2x8x128xf32> to vector<8x128xf32>
        %86 = arith.addf %83, %85 : vector<8x128xf32>
        %c0_47 = arith.constant 0 : index
        %c2_48 = arith.constant 2 : index
        %c0_49 = arith.constant 0 : index
        %c0_50 = arith.constant 0 : index
        %87 = vector.load %arg4[%c0_47, %c2_48, %c0_49, %c0_50] : memref<1x5x8x128xf32, #tpu.memory_space<vmem>>, vector<1x1x8x128xf32>
        %88 = vector.shape_cast %87 : vector<1x1x8x128xf32> to vector<8x128xf32>
        %89 = vector.shape_cast %86 : vector<8x128xf32> to vector<1x1x8x128xf32>
        tpu.vector_store %arg4[%c0_47, %c2_48, %c0_49, %c0_50], %89 {strides = array<i32>} : memref<1x5x8x128xf32, #tpu.memory_space<vmem>>, vector<1x1x8x128xf32>,
        %cst_51 = arith.constant 0.000000e+00 : f32
        %90 = vector.broadcast %cst_51 : f32 to vector<16x128xf32>
        %91 = arith.select %59, %37, %90 : vector<16x128xi1>, vector<16x128xf32>
        %c0_52 = arith.constant 0 : index
        %c3 = arith.constant 3 : index
        %c0_53 = arith.constant 0 : index
        %c0_54 = arith.constant 0 : index
        %92 = vector.load %arg4[%c0_52, %c3, %c0_53, %c0_54] : memref<1x5x8x128xf32, #tpu.memory_space<vmem>>, vector<1x1x8x128xf32>
        %93 = vector.shape_cast %92 : vector<1x1x8x128xf32> to vector<8x128xf32>
        %94 = vector.shape_cast %91 : vector<16x128xf32> to vector<2x8x128xf32>
        %cst_55 = arith.constant dense<0.000000e+00> : vector<8x128xf32>
        %95 = vector.multi_reduction <add>, %94, %cst_55 [0] : vector<2x8x128xf32> to vector<8x128xf32>
        %96 = arith.addf %93, %95 : vector<8x128xf32>
        %c0_56 = arith.constant 0 : index
        %c3_57 = arith.constant 3 : index
        %c0_58 = arith.constant 0 : index
        %c0_59 = arith.constant 0 : index
        %97 = vector.load %arg4[%c0_56, %c3_57, %c0_58, %c0_59] : memref<1x5x8x128xf32, #tpu.memory_space<vmem>>, vector<1x1x8x128xf32>
        %98 = vector.shape_cast %97 : vector<1x1x8x128xf32> to vector<8x128xf32>
        %99 = vector.shape_cast %96 : vector<8x128xf32> to vector<1x1x8x128xf32>
        tpu.vector_store %arg4[%c0_56, %c3_57, %c0_58, %c0_59], %99 {strides = array<i32>} : memref<1x5x8x128xf32, #tpu.memory_space<vmem>>, vector<1x1x8x128xf32>,
        %cst_60 = arith.constant 0.000000e+00 : f32
        %100 = vector.broadcast %cst_60 : f32 to vector<16x128xf32>
        %101 = arith.select %59, %44, %100 : vector<16x128xi1>, vector<16x128xf32>
        %c0_61 = arith.constant 0 : index
        %c4 = arith.constant 4 : index
        %c0_62 = arith.constant 0 : index
        %c0_63 = arith.constant 0 : index
        %102 = vector.load %arg4[%c0_61, %c4, %c0_62, %c0_63] : memref<1x5x8x128xf32, #tpu.memory_space<vmem>>, vector<1x1x8x128xf32>
        %103 = vector.shape_cast %102 : vector<1x1x8x128xf32> to vector<8x128xf32>
        %104 = vector.shape_cast %101 : vector<16x128xf32> to vector<2x8x128xf32>
        %cst_64 = arith.constant dense<0.000000e+00> : vector<8x128xf32>
        %105 = vector.multi_reduction <add>, %104, %cst_64 [0] : vector<2x8x128xf32> to vector<8x128xf32>
        %106 = arith.addf %103, %105 : vector<8x128xf32>
        %c0_65 = arith.constant 0 : index
        %c4_66 = arith.constant 4 : index
        %c0_67 = arith.constant 0 : index
        %c0_68 = arith.constant 0 : index
        %107 = vector.load %arg4[%c0_65, %c4_66, %c0_67, %c0_68] : memref<1x5x8x128xf32, #tpu.memory_space<vmem>>, vector<1x1x8x128xf32>
        %108 = vector.shape_cast %107 : vector<1x1x8x128xf32> to vector<8x128xf32>
        %109 = vector.shape_cast %106 : vector<8x128xf32> to vector<1x1x8x128xf32>
        tpu.vector_store %arg4[%c0_65, %c4_66, %c0_67, %c0_68], %109 {strides = array<i32>} : memref<1x5x8x128xf32, #tpu.memory_space<vmem>>, vector<1x1x8x128xf32>,
      } else {
      }
    } else {
    }
    return
  }
  func.func @transform_0(%arg0: i32, %arg1: i32) -> (i32, i32) {
    %c1_i32 = arith.constant 1 : i32
    %0 = arith.muli %arg0, %c1_i32 : i32
    %1 = arith.addi %0, %arg1 : i32
    %c0_i32 = arith.constant 0 : i32
    %2 = arith.minsi %1, %c0_i32 : i32
    %c0_i32_0 = arith.constant 0 : i32
    %c0_i32_1 = arith.constant 0 : i32
    return %2, %c0_i32_0 : i32, i32
  }
  func.func @transform_1(%arg0: i32, %arg1: i32) -> (i32, i32) {
    %c1_i32 = arith.constant 1 : i32
    %0 = arith.muli %arg0, %c1_i32 : i32
    %1 = arith.addi %0, %arg1 : i32
    %c0_i32 = arith.constant 0 : i32
    %2 = arith.minsi %1, %c0_i32 : i32
    %c0_i32_0 = arith.constant 0 : i32
    %c0_i32_1 = arith.constant 0 : i32
    return %2, %c0_i32_0 : i32, i32
  }
  func.func @transform_2(%arg0: i32, %arg1: i32) -> (i32, i32, i32, i32) {
    %c0_i32 = arith.constant 0 : i32
    %c0_i32_0 = arith.constant 0 : i32
    %c0_i32_1 = arith.constant 0 : i32
    %c0_i32_2 = arith.constant 0 : i32
    return %arg0, %c0_i32, %c0_i32_0, %c0_i32_1 : i32, i32, i32, i32
  }
}

</mosaic_0001>

<bundles_post_ra>
// kernel: tpu_custom_call.1
= control target key start
LH: loop header
LB: loop body
LE: loop exit
PB: predicated region body
PF: predicated region fallthrough
CT: control target
= control target key end

     0   :  { %7 = vsyncpa [#allocation3], 0  ;;  %s391_s0 = inlined_call_operand.hbm [shape: f32[16,128], index: 0, kind: input, shape index: {}]   ;;  %s392_s1 = inlined_call_operand.hbm [shape: bf16[16,128], index: 1, kind: input, shape index: {}]   ;;  %s393_s2 = inlined_call_operand.hbm [shape: f32[1,5,8,128], index: 2, kind: output, shape index: {}]  }
   0x1   :  { %8 = vsyncpa [#allocation6], 0 }
   0x2   :  { %9 = vsyncpa [#allocation4], 0  ;;  %s327_s9 = smov [#allocation2]   ;;  %s255_s13 = scalar_lea.hbm %s391_s0, 256 }
   0x3   :  { %s21_s10 = sshll.u32 %s327_s9, 4  ;;  %p256_p0 = scmp.ne.s32.totalorder %s391_s0, %s255_s13  ;;  %s22_s10 = int_to_ptr.vmem [resolvable:$true] %s21_s10 }
   0x4   :  { %p259_p1 = scmp.lt.u32.totalorder %s255_s13, %s391_s0 }
   0x6   :  { %p261_p2 = pnand %p259_p1, %p256_p0 }
   0x8   :  { %264 = shalt.err (!%p261_p2)
}
   0x9   :  { %s265_s18 = scalar_lea.vmem %s22_s10, 256  ;;  %p270_p4 = scmp.lt.s32.totalorder %s22_s10, %s22_s10 }
   0xa   :  { %p266_p3 = scmp.ne.s32.totalorder %s22_s10, %s265_s18  ;;  %p271_p5 = scmp.lt.s32.totalorder %s265_s18, %s265_s18 }
   0xc   :  { %p272_p6 = por %p271_p5, %p270_p4 }
   0xe   :  { %p273_p7 = pnand %p272_p6, %p266_p3 }
  0x10   :  { %276 = shalt.err (!%p273_p7)
}
  0x11   :  { %s328_s19 = smov 128   ;;  %s329_s20 = smov 8  }
  0x12   :  { %27 = dma.hbm_to_vmem [thread:$0]  %s391_s0, 256, %s22_s10, [#allocation3], %s328_s19, %s328_s19, %s329_s20  }
  0x13   :  { %s330_s23 = smov [#allocation5]   ;;  %s277_s27 = scalar_lea.hbm %s392_s1, 128 }
  0x14   :  { %s39_s24 = sshll.u32 %s330_s23, 4  ;;  %p278_p8 = scmp.ne.s32.totalorder %s392_s1, %s277_s27  ;;  %s40_s24 = int_to_ptr.vmem [resolvable:$true] %s39_s24 }
  0x15   :  { %p281_p9 = scmp.lt.u32.totalorder %s277_s27, %s392_s1 }
  0x17   :  { %p283_p10 = pnand %p281_p9, %p278_p8 }
  0x19   :  { %286 = shalt.err (!%p283_p10)
}
  0x1a   :  { %s287_s4 = scalar_lea.vmem %s40_s24, 128  ;;  %p292_p12 = scmp.lt.s32.totalorder %s40_s24, %s40_s24 }
  0x1b   :  { %p288_p11 = scmp.ne.s32.totalorder %s40_s24, %s287_s4  ;;  %p293_p13 = scmp.lt.s32.totalorder %s287_s4, %s287_s4 }
  0x1d   :  { %p294_p0 = por %p293_p13, %p292_p12 }
  0x1f   :  { %p295_p1 = pnand %p294_p0, %p288_p11 }
  0x21   :  { %298 = shalt.err (!%p295_p1)
}
  0x22   :  { %s331_s0 = smov 64   ;;  %s332_s5 = smov 4  }
  0x23   :  { %45 = dma.hbm_to_vmem [thread:$0]  %s392_s1, 128, %s40_s24, [#allocation6], %s331_s0, %s331_s0, %s332_s5  }
  0x24   :  { %321 = dma.done.wait [#allocation3], 256  }
  0x25   :  { %322 = vsyncadd [#allocation3], 4294967040 }
  0x26   :  { %323 = dma.done.wait [#allocation6], 128  }
  0x27   :  { %324 = vsyncadd [#allocation6], 4294967168  ;;  %v74_v0 = vld [vmem:[#allocation2] sm:$0xff]  ;;  %v75_v1 = vld [vmem:[#allocation2 + $0x8] sm:$0xff]  ;;  %s333_s1 = smov [#allocation7]  }
  0x28   :  { %v232_v2 = vld [vmem:[#allocation5] sm:$0xff]   ;;  %v80_v5 = vand.u32 2147483647, %v74_v0  ;;  %v81_v6 = vand.u32 2147483647, %v75_v1  ;;  %v98_v16 = vmax.f32 %v74_v0, 0.0 }
  0x29   :  { %v233_v3 = vunpack.c.l.bf16 %v232_v2  ;;  %v234_v4 = vunpack.c.h.bf16 %v232_v2  ;;  %v99_v17 = vmax.f32 %v75_v1, 0.0  ;;  %v94_v18 = vmin.f32 %v74_v0, 0.0  ;;  %s214_s8 = sshll.u32 %s333_s1, 4  ;;  %s215_s8 = int_to_ptr.vmem [resolvable:$true] %s214_s8 }
  0x2a   :  { %v82_v7 = vsub.f32 0.0, %v80_v5  ;;  %v83_v8 = vsub.f32 0.0, %v81_v6  ;;  %v100_v19 = vsub.f32 0.0, %v98_v16  ;;  %v95_v21 = vmin.f32 %v75_v1, 0.0  ;;  %s299_s9 = scalar_lea.vmem %s215_s8, 640  ;;  %p304_p3 = scmp.lt.s32.totalorder %s215_s8, %s215_s8 }
  0x2b   :  { %v149_v9 = vadd.f32 %v234_v4, %v233_v3  ;;  %v101_v22 = vsub.f32 0.0, %v99_v17  ;;  %v112_v28 = vsub.f32 1.0, %v233_v3  ;;  %v113_v31 = vsub.f32 1.0, %v234_v4  ;;  %p300_p2 = scmp.ne.s32.totalorder %s215_s8, %s299_s9  ;;  %p305_p4 = scmp.lt.s32.totalorder %s299_s9, %s299_s9 }
  0x2c   :  { %v84_v10 = vmul.f32 1.442695, %v82_v7  ;;  %v86_v11 = vmul.f32 1.442695, %v83_v8 }
  0x2d   :  { %151 = vst [vmem:[#allocation7 + $0x10] sm:$0xff] %v149_v9  ;;  %p306_p5 = por %p305_p4, %p304_p3 }
  0x2e   :  { %243 = vpow2.f32 %v84_v10 }
  0x2f   :  { %245 = vpow2.f32 %v86_v11  ;;  %p307_p6 = pnand %p306_p5, %p300_p2 }
  0x38   :  { %v244_v12 = vpop.eup %243 }
  0x39   :  { %v246_v13 = vpop.eup %245  ;;  %v88_v14 = vadd.f32 1.0, %v244_v12 }
  0x3a   :  { %v89_v15 = vadd.f32 1.0, %v246_v13 }
  0x3b   :  { %247 = vlog2.f32 %v88_v14 }
  0x3c   :  { %249 = vlog2.f32 %v89_v15 }
  0x45   :  { %v248_v20 = vpop.eup %247 }
  0x46   :  { %v250_v23 = vpop.eup %249  ;;  %v91_v24 = vmul.f32 0.6931472, %v248_v20 }
  0x47   :  { %v93_v25 = vmul.f32 0.6931472, %v250_v23 }
  0x48   :  { %v96_v26 = vsub.f32 %v94_v18, %v91_v24  ;;  %v102_v27 = vsub.f32 %v100_v19, %v91_v24 }
  0x49   :  { %v97_v29 = vsub.f32 %v95_v21, %v93_v25  ;;  %v103_v30 = vsub.f32 %v101_v22, %v93_v25 }
  0x4a   :  { %v104_v32 = vmul.f32 1.442695, %v96_v26  ;;  %v108_v33 = vmax.f32 %v96_v26, -100.0  ;;  %v114_v34 = vmax.f32 %v102_v27, -100.0 }
  0x4b   :  { %v106_v35 = vmul.f32 1.442695, %v97_v29  ;;  %v109_v36 = vmax.f32 %v97_v29, -100.0  ;;  %v115_v37 = vmax.f32 %v103_v30, -100.0 }
  0x4c   :  { %251 = vpow2.f32 %v104_v32  ;;  %v110_v38 = vmul.f32 %v233_v3, %v108_v33  ;;  %v116_v39 = vmul.f32 %v114_v34, %v112_v28 }
  0x4d   :  { %253 = vpow2.f32 %v106_v35  ;;  %v111_v40 = vmul.f32 %v234_v4, %v109_v36  ;;  %v117_v41 = vmul.f32 %v115_v37, %v113_v31 }
  0x4e   :  { %v118_v42 = vadd.f32 %v116_v39, %v110_v38 }
  0x4f   :  { %v119_v43 = vadd.f32 %v117_v41, %v111_v40 }
  0x50   :  { %v120_v44 = vsub.f32 0.0, %v118_v42 }
  0x51   :  { %v121_v45 = vsub.f32 0.0, %v119_v43 }
  0x53   :  { %v154_v46 = vadd.f32 %v121_v45, %v120_v44 }
  0x55   :  { %156 = vst [vmem:[#allocation7 + $0x18] sm:$0xff] %v154_v46 }
  0x56   :  { %v252_v47 = vpop.eup %251 }
  0x57   :  { %v254_v48 = vpop.eup %253  ;;  %v130_v49 = vmul.f32 %v252_v47, %v233_v3  ;;  %v122_v50 = vmax.f32 %v252_v47, 1e-07 }
  0x58   :  { %v131_v51 = vmul.f32 %v254_v48, %v234_v4  ;;  %v144_v52 = vadd.f32 %v254_v48, %v252_v47  ;;  %v123_v53 = vmax.f32 %v254_v48, 1e-07 }
  0x59   :  { %v124_v54 = vmin.f32 %v122_v50, 0.9999999 }
  0x5a   :  { %v139_v55 = vadd.f32 %v131_v51, %v130_v49  ;;  %v125_v56 = vmin.f32 %v123_v53, 0.9999999  ;;  %146 = vst [vmem:[#allocation7 + $0x8] sm:$0xff] %v144_v52 }
  0x5b   :  { %v126_v57 = vsub.f32 1.0, %v124_v54 }
  0x5c   :  { %v127_v58 = vsub.f32 1.0, %v125_v56  ;;  %141 = vst [vmem:[#allocation7] sm:$0xff] %v139_v55 }
  0x5d   :  { %v128_v59 = vmul.f32 %v126_v57, %v126_v57 }
  0x5e   :  { %v129_v60 = vmul.f32 %v127_v58, %v127_v58 }
  0x60   :  { %v159_v61 = vadd.f32 %v129_v60, %v128_v59 }
  0x62   :  { %161 = vst [vmem:[#allocation7 + $0x20] sm:$0xff] %v159_v61 }
  0x63   :  { %310 = shalt.err (!%p307_p6)
}
  0x64   :  { %s311_s12 = scalar_lea.hbm %s393_s2, 640 }
  0x65   :  { %p312_p7 = scmp.ne.s32.totalorder %s393_s2, %s311_s12  ;;  %p315_p8 = scmp.lt.u32.totalorder %s311_s12, %s393_s2 }
  0x67   :  { %p317_p9 = pnand %p315_p8, %p312_p7 }
  0x69   :  { %320 = shalt.err (!%p317_p9)
}
  0x6a   :  { %220 = dma.vmem_to_hbm [thread:$0]  %s215_s8, 640, %s393_s2, [#allocation4], %s328_s19, %s328_s19, %s329_s20  }
  0x6b   :  { %325 = dma.done.wait [#allocation4], 640  }
  0x6c   :  { %326 = vsyncadd [#allocation4], 4294966656 }
  0x6d   :  { %224 = vsyncpa [#allocation3], 1 }
  0x6e   :  { %225 = vsyncpa [#allocation6], 1 }
  0x6f   :  { %226 = vsyncpa [#allocation4], 1 }

</bundles_post_ra>
